<compile_context>
chip_gen: v7x
topology: tpu7x:2x2x1
jax: 0.10.0
libtpu: 0.0.40
codegen_flags: <defaults>
</compile_context>

<pallas_src>
import functools

import jax
import jax.numpy as jnp
from jax import lax
from jax.experimental import pallas as pl
from jax.experimental.pallas import tpu as pltpu

EMB_DIM = 50
HIDDEN_LAYER_DIM = 5
HIDDEN_LAYER_NUM = 3
LAG_NUMBER = 3
NUM_LAGS = 3
USE_TWO_NETWORKS = False

DEFAULT_TILE_B = 2048  # per-chip sweet spot: v5e 1024-2048, v6e 2048-4096, v7x 4096-8192


def _flex_encoding_kernel(x_ref, w_in_ref, b_in_ref, w_h_ref, b_h_ref,
                          w_out_ref, b_out_ref, out_ref):
    """Batch-on-lanes forward for one (tile_b, EMB_DIM) slab of x.

    x_ref     : (tile_b, EMB_DIM)   f32 VMEM
    w_in_ref  : (HIDDEN, EMB_DIM)   f32 VMEM (resident; PyTorch out x in layout)
    b_in_ref  : (HIDDEN,)           f32 SMEM
    w_h_ref   : (HIDDEN, HIDDEN)    f32 SMEM
    b_h_ref   : (HIDDEN,)           f32 SMEM
    w_out_ref : (HIDDEN,)           f32 SMEM
    b_out_ref : (1,)                f32 SMEM
    out_ref   : (1, tile_b)         f32 VMEM (lane-dense writeback)
    """
    hd = HIDDEN_LAYER_DIM

    # Input layer on the MXU:  h[j, b] = sum_e W_in[j, e] * x[b, e]  -> (5, tile_b).
    # f32 operands + HIGHEST precision keep parity with the PyTorch f32 module.
    h = lax.dot_general(
        w_in_ref[...], x_ref[...],
        dimension_numbers=(((1,), (1,)), ((), ())),
        preferred_element_type=jnp.float32,
        precision=lax.Precision.HIGHEST)

    # Bias + ReLU, split into per-feature rows (1, tile_b); the 5-wide feature
    # axis never touches the 128-lane axis again.
    rows = [jnp.maximum(h[j:j + 1, :] + b_in_ref[j], 0.0) for j in range(hd)]

    # Shared hidden layer applied HIDDEN_LAYER_NUM times: 5x5 scalar x row FMAs
    # on the VPU, weights read as SMEM scalars.
    for _ in range(HIDDEN_LAYER_NUM):
        new_rows = []
        for j in range(hd):
            acc = rows[0] * w_h_ref[j, 0]
            for k in range(1, hd):
                acc = acc + rows[k] * w_h_ref[j, k]
            new_rows.append(jnp.maximum(acc + b_h_ref[j], 0.0))
        rows = new_rows

    # Output layer (single unit) + ReLU -> one lane-dense row. The
    # repeat_interleave to lag_number columns happens in the wrapper.
    y = rows[0] * w_out_ref[0]
    for k in range(1, hd):
        y = y + rows[k] * w_out_ref[k]
    out_ref[...] = jnp.maximum(y + b_out_ref[0], 0.0)


@functools.partial(jax.jit, static_argnames=("tile_b",))
def flex_encoding_forward(x, params, *, tile_b=DEFAULT_TILE_B):
    """x: (B, emb_dim) float32.  Returns y_pred: (B, lag_number) float32."""
    w_in, b_in, w_h, b_h, w_out, b_out = params
    B = x.shape[0]

    # Single block (dims == full dims, always legal) for small B; otherwise a
    # lane-aligned tile with a cdiv grid — Pallas clips the ragged last block,
    # so there is no wrapper-side pad or slice pass.
    if B <= tile_b:
        tile_b = B
    else:
        tile_b = max(128, (tile_b // 128) * 128)
    grid = (pl.cdiv(B, tile_b),)

    smem = pl.BlockSpec(memory_space=pltpu.MemorySpace.SMEM)

    y_row = pl.pallas_call(
        _flex_encoding_kernel,
        out_shape=jax.ShapeDtypeStruct((1, B), jnp.float32),
        grid=grid,
        in_specs=[
            pl.BlockSpec((tile_b, EMB_DIM), lambda i: (i, 0)),            # x tiles
            pl.BlockSpec((HIDDEN_LAYER_DIM, EMB_DIM), lambda i: (0, 0)),  # w_in (resident)
            smem,                                                          # b_in
            smem,                                                          # w_h
            smem,                                                          # b_h
            smem,                                                          # w_out
            smem,                                                          # b_out
        ],
        out_specs=pl.BlockSpec((1, tile_b), lambda i: (0, i)),
        compiler_params=pltpu.CompilerParams(
            dimension_semantics=("parallel",)),
    )(x, w_in, b_in, w_h, b_h, w_out, b_out)

    # repeat_interleave(y, lag_number, dim=-1) on the (B, 1) column: tiny
    # (12 B/row) wrapper-side broadcast instead of a padded in-kernel write.
    return jnp.broadcast_to(y_row.reshape(B, 1), (B, LAG_NUMBER))


def init_params(key):
    """nn.Linear default init U(-1/sqrt(fan_in), 1/sqrt(fan_in)), PyTorch
    (out_features, in_features) weight layout."""
    ks = jax.random.split(key, 6)

    def linear(kw, kb, fan_in, fan_out):
        bound = float(fan_in) ** -0.5
        w = jax.random.uniform(kw, (fan_out, fan_in), jnp.float32, -bound, bound)
        b = jax.random.uniform(kb, (fan_out,), jnp.float32, -bound, bound)
        return w, b

    w_in, b_in = linear(ks[0], ks[1], EMB_DIM, HIDDEN_LAYER_DIM)
    w_h, b_h = linear(ks[2], ks[3], HIDDEN_LAYER_DIM, HIDDEN_LAYER_DIM)
    w_out, b_out = linear(ks[4], ks[5], HIDDEN_LAYER_DIM, 1)
    return (w_in, b_in, w_h, b_h, w_out.reshape(HIDDEN_LAYER_DIM), b_out)


def reference_forward(x, params):
    """Pure-JAX f32 reference matching the PyTorch module."""
    w_in, b_in, w_h, b_h, w_out, b_out = params
    hp = lax.Precision.HIGHEST
    h = jnp.maximum(jnp.dot(x, w_in.T, precision=hp) + b_in, 0.0)
    for _ in range(HIDDEN_LAYER_NUM):
        h = jnp.maximum(jnp.dot(h, w_h.T, precision=hp) + b_h, 0.0)
    y = jnp.maximum(jnp.dot(h, w_out.reshape(-1, 1), precision=hp) + b_out, 0.0)
    return jnp.repeat(y, LAG_NUMBER, axis=-1)


if __name__ == "__main__":
    key = jax.random.PRNGKey(0)
    k_param, k_x1, k_x2 = jax.random.split(key, 3)
    params = init_params(k_param)

    # Small batch: single (full-extent) block.
    B1 = 8
    x1 = jax.random.normal(k_x1, (B1, EMB_DIM), dtype=jnp.float32)
    y1 = jax.block_until_ready(flex_encoding_forward(x1, params))
    y1_ref = reference_forward(x1, params)
    assert y1.shape == (B1, LAG_NUMBER)
    assert jnp.allclose(y1, y1_ref, atol=1e-4, rtol=1e-4)

    # Multi-tile grid with a ragged last block (300 = 2 * 128 + 44).
    B2 = 300
    x2 = jax.random.normal(k_x2, (B2, EMB_DIM), dtype=jnp.float32)
    y2 = jax.block_until_ready(flex_encoding_forward(x2, params, tile_b=128))
    y2_ref = reference_forward(x2, params)
    assert y2.shape == (B2, LAG_NUMBER)
    assert jnp.allclose(y2, y2_ref, atol=1e-4, rtol=1e-4)

    print("KERNEL_OK")
</pallas_src>

<mosaic_0001>
module attributes {stable_mosaic.version = 11 : i64} {
  func.func @_flex_encoding_kernel(%arg0: i32, %arg1: memref<8x50xf32, #tpu.memory_space<vmem>>, %arg2: memref<5x50xf32, #tpu.memory_space<vmem>>, %arg3: memref<5xf32, #tpu.memory_space<smem>>, %arg4: memref<5x5xf32, #tpu.memory_space<smem>>, %arg5: memref<5xf32, #tpu.memory_space<smem>>, %arg6: memref<5xf32, #tpu.memory_space<smem>>, %arg7: memref<1xf32, #tpu.memory_space<smem>>, %arg8: memref<1x8xf32, #tpu.memory_space<vmem>>) attributes {dimension_semantics = [#tpu.dimension_semantics<parallel>], iteration_bounds = array<i64: 1>, scalar_prefetch = 0 : i64, scratch_operands = 0 : i64, tpu.core_type = #tpu.core_type<tc>, window_params = [{transform_indices = @transform_0, window_bounds = array<i64: 8, 50>}, {pipeline_mode = #tpu.pipeline_mode<synchronous>, transform_indices = @transform_1, window_bounds = array<i64: 5, 50>}, {transform_indices = @transform_2, window_bounds = array<i64: 5>}, {transform_indices = @transform_3, window_bounds = array<i64: 5, 5>}, {transform_indices = @transform_4, window_bounds = array<i64: 5>}, {transform_indices = @transform_5, window_bounds = array<i64: 5>}, {transform_indices = @transform_6, window_bounds = array<i64: 1>}, {transform_indices = @transform_7, window_bounds = array<i64: 1, 8>}]} {
    %c0 = arith.constant 0 : index
    %c0_0 = arith.constant 0 : index
    %0 = vector.load %arg2[%c0, %c0_0] : memref<5x50xf32, #tpu.memory_space<vmem>>, vector<5x50xf32>
    %c0_1 = arith.constant 0 : index
    %c0_2 = arith.constant 0 : index
    %1 = vector.load %arg1[%c0_1, %c0_2] : memref<8x50xf32, #tpu.memory_space<vmem>>, vector<8x50xf32>
    %cst = arith.constant dense<0.000000e+00> : vector<5x8xf32>
    %2 = tpu.matmul %0, %1, %cst {dimension_numbers = #tpu.dot_dimension_numbers<[1], [1], [0], [0], [0, 0, 1, 0], [], []>, precision = #tpu.contract_precision<fp32>} : vector<5x50xf32>, vector<8x50xf32>, vector<5x8xf32> -> vector<5x8xf32>
    %3 = vector.extract_strided_slice %2 {offsets = [0, 0], sizes = [1, 8], strides = [1, 1]} : vector<5x8xf32> to vector<1x8xf32>
    %c0_3 = arith.constant 0 : index
    %4 = memref.load %arg3[%c0_3] : memref<5xf32, #tpu.memory_space<smem>>
    %5 = vector.broadcast %4 : f32 to vector<1x8xf32>
    %6 = arith.addf %3, %5 : vector<1x8xf32>
    %cst_4 = arith.constant 0.000000e+00 : f32
    %7 = vector.broadcast %cst_4 : f32 to vector<1x8xf32>
    %8 = arith.maximumf %6, %7 : vector<1x8xf32>
    %9 = vector.extract_strided_slice %2 {offsets = [1, 0], sizes = [1, 8], strides = [1, 1]} : vector<5x8xf32> to vector<1x8xf32>
    %c1 = arith.constant 1 : index
    %10 = memref.load %arg3[%c1] : memref<5xf32, #tpu.memory_space<smem>>
    %11 = vector.broadcast %10 : f32 to vector<1x8xf32>
    %12 = arith.addf %9, %11 : vector<1x8xf32>
    %cst_5 = arith.constant 0.000000e+00 : f32
    %13 = vector.broadcast %cst_5 : f32 to vector<1x8xf32>
    %14 = arith.maximumf %12, %13 : vector<1x8xf32>
    %15 = vector.extract_strided_slice %2 {offsets = [2, 0], sizes = [1, 8], strides = [1, 1]} : vector<5x8xf32> to vector<1x8xf32>
    %c2 = arith.constant 2 : index
    %16 = memref.load %arg3[%c2] : memref<5xf32, #tpu.memory_space<smem>>
    %17 = vector.broadcast %16 : f32 to vector<1x8xf32>
    %18 = arith.addf %15, %17 : vector<1x8xf32>
    %cst_6 = arith.constant 0.000000e+00 : f32
    %19 = vector.broadcast %cst_6 : f32 to vector<1x8xf32>
    %20 = arith.maximumf %18, %19 : vector<1x8xf32>
    %21 = vector.extract_strided_slice %2 {offsets = [3, 0], sizes = [1, 8], strides = [1, 1]} : vector<5x8xf32> to vector<1x8xf32>
    %c3 = arith.constant 3 : index
    %22 = memref.load %arg3[%c3] : memref<5xf32, #tpu.memory_space<smem>>
    %23 = vector.broadcast %22 : f32 to vector<1x8xf32>
    %24 = arith.addf %21, %23 : vector<1x8xf32>
    %cst_7 = arith.constant 0.000000e+00 : f32
    %25 = vector.broadcast %cst_7 : f32 to vector<1x8xf32>
    %26 = arith.maximumf %24, %25 : vector<1x8xf32>
    %27 = vector.extract_strided_slice %2 {offsets = [4, 0], sizes = [1, 8], strides = [1, 1]} : vector<5x8xf32> to vector<1x8xf32>
    %c4 = arith.constant 4 : index
    %28 = memref.load %arg3[%c4] : memref<5xf32, #tpu.memory_space<smem>>
    %29 = vector.broadcast %28 : f32 to vector<1x8xf32>
    %30 = arith.addf %27, %29 : vector<1x8xf32>
    %cst_8 = arith.constant 0.000000e+00 : f32
    %31 = vector.broadcast %cst_8 : f32 to vector<1x8xf32>
    %32 = arith.maximumf %30, %31 : vector<1x8xf32>
    %c0_9 = arith.constant 0 : index
    %c0_10 = arith.constant 0 : index
    %33 = memref.load %arg4[%c0_9, %c0_10] : memref<5x5xf32, #tpu.memory_space<smem>>
    %34 = vector.broadcast %33 : f32 to vector<1x8xf32>
    %35 = arith.mulf %8, %34 : vector<1x8xf32>
    %c0_11 = arith.constant 0 : index
    %c1_12 = arith.constant 1 : index
    %36 = memref.load %arg4[%c0_11, %c1_12] : memref<5x5xf32, #tpu.memory_space<smem>>
    %37 = vector.broadcast %36 : f32 to vector<1x8xf32>
    %38 = arith.mulf %14, %37 : vector<1x8xf32>
    %39 = arith.addf %35, %38 : vector<1x8xf32>
    %c0_13 = arith.constant 0 : index
    %c2_14 = arith.constant 2 : index
    %40 = memref.load %arg4[%c0_13, %c2_14] : memref<5x5xf32, #tpu.memory_space<smem>>
    %41 = vector.broadcast %40 : f32 to vector<1x8xf32>
    %42 = arith.mulf %20, %41 : vector<1x8xf32>
    %43 = arith.addf %39, %42 : vector<1x8xf32>
    %c0_15 = arith.constant 0 : index
    %c3_16 = arith.constant 3 : index
    %44 = memref.load %arg4[%c0_15, %c3_16] : memref<5x5xf32, #tpu.memory_space<smem>>
    %45 = vector.broadcast %44 : f32 to vector<1x8xf32>
    %46 = arith.mulf %26, %45 : vector<1x8xf32>
    %47 = arith.addf %43, %46 : vector<1x8xf32>
    %c0_17 = arith.constant 0 : index
    %c4_18 = arith.constant 4 : index
    %48 = memref.load %arg4[%c0_17, %c4_18] : memref<5x5xf32, #tpu.memory_space<smem>>
    %49 = vector.broadcast %48 : f32 to vector<1x8xf32>
    %50 = arith.mulf %32, %49 : vector<1x8xf32>
    %51 = arith.addf %47, %50 : vector<1x8xf32>
    %c0_19 = arith.constant 0 : index
    %52 = memref.load %arg5[%c0_19] : memref<5xf32, #tpu.memory_space<smem>>
    %53 = vector.broadcast %52 : f32 to vector<1x8xf32>
    %54 = arith.addf %51, %53 : vector<1x8xf32>
    %cst_20 = arith.constant 0.000000e+00 : f32
    %55 = vector.broadcast %cst_20 : f32 to vector<1x8xf32>
    %56 = arith.maximumf %54, %55 : vector<1x8xf32>
    %c1_21 = arith.constant 1 : index
    %c0_22 = arith.constant 0 : index
    %57 = memref.load %arg4[%c1_21, %c0_22] : memref<5x5xf32, #tpu.memory_space<smem>>
    %58 = vector.broadcast %57 : f32 to vector<1x8xf32>
    %59 = arith.mulf %8, %58 : vector<1x8xf32>
    %c1_23 = arith.constant 1 : index
    %c1_24 = arith.constant 1 : index
    %60 = memref.load %arg4[%c1_23, %c1_24] : memref<5x5xf32, #tpu.memory_space<smem>>
    %61 = vector.broadcast %60 : f32 to vector<1x8xf32>
    %62 = arith.mulf %14, %61 : vector<1x8xf32>
    %63 = arith.addf %59, %62 : vector<1x8xf32>
    %c1_25 = arith.constant 1 : index
    %c2_26 = arith.constant 2 : index
    %64 = memref.load %arg4[%c1_25, %c2_26] : memref<5x5xf32, #tpu.memory_space<smem>>
    %65 = vector.broadcast %64 : f32 to vector<1x8xf32>
    %66 = arith.mulf %20, %65 : vector<1x8xf32>
    %67 = arith.addf %63, %66 : vector<1x8xf32>
    %c1_27 = arith.constant 1 : index
    %c3_28 = arith.constant 3 : index
    %68 = memref.load %arg4[%c1_27, %c3_28] : memref<5x5xf32, #tpu.memory_space<smem>>
    %69 = vector.broadcast %68 : f32 to vector<1x8xf32>
    %70 = arith.mulf %26, %69 : vector<1x8xf32>
    %71 = arith.addf %67, %70 : vector<1x8xf32>
    %c1_29 = arith.constant 1 : index
    %c4_30 = arith.constant 4 : index
    %72 = memref.load %arg4[%c1_29, %c4_30] : memref<5x5xf32, #tpu.memory_space<smem>>
    %73 = vector.broadcast %72 : f32 to vector<1x8xf32>
    %74 = arith.mulf %32, %73 : vector<1x8xf32>
    %75 = arith.addf %71, %74 : vector<1x8xf32>
    %c1_31 = arith.constant 1 : index
    %76 = memref.load %arg5[%c1_31] : memref<5xf32, #tpu.memory_space<smem>>
    %77 = vector.broadcast %76 : f32 to vector<1x8xf32>
    %78 = arith.addf %75, %77 : vector<1x8xf32>
    %cst_32 = arith.constant 0.000000e+00 : f32
    %79 = vector.broadcast %cst_32 : f32 to vector<1x8xf32>
    %80 = arith.maximumf %78, %79 : vector<1x8xf32>
    %c2_33 = arith.constant 2 : index
    %c0_34 = arith.constant 0 : index
    %81 = memref.load %arg4[%c2_33, %c0_34] : memref<5x5xf32, #tpu.memory_space<smem>>
    %82 = vector.broadcast %81 : f32 to vector<1x8xf32>
    %83 = arith.mulf %8, %82 : vector<1x8xf32>
    %c2_35 = arith.constant 2 : index
    %c1_36 = arith.constant 1 : index
    %84 = memref.load %arg4[%c2_35, %c1_36] : memref<5x5xf32, #tpu.memory_space<smem>>
    %85 = vector.broadcast %84 : f32 to vector<1x8xf32>
    %86 = arith.mulf %14, %85 : vector<1x8xf32>
    %87 = arith.addf %83, %86 : vector<1x8xf32>
    %c2_37 = arith.constant 2 : index
    %c2_38 = arith.constant 2 : index
    %88 = memref.load %arg4[%c2_37, %c2_38] : memref<5x5xf32, #tpu.memory_space<smem>>
    %89 = vector.broadcast %88 : f32 to vector<1x8xf32>
    %90 = arith.mulf %20, %89 : vector<1x8xf32>
    %91 = arith.addf %87, %90 : vector<1x8xf32>
    %c2_39 = arith.constant 2 : index
    %c3_40 = arith.constant 3 : index
    %92 = memref.load %arg4[%c2_39, %c3_40] : memref<5x5xf32, #tpu.memory_space<smem>>
    %93 = vector.broadcast %92 : f32 to vector<1x8xf32>
    %94 = arith.mulf %26, %93 : vector<1x8xf32>
    %95 = arith.addf %91, %94 : vector<1x8xf32>
    %c2_41 = arith.constant 2 : index
    %c4_42 = arith.constant 4 : index
    %96 = memref.load %arg4[%c2_41, %c4_42] : memref<5x5xf32, #tpu.memory_space<smem>>
    %97 = vector.broadcast %96 : f32 to vector<1x8xf32>
    %98 = arith.mulf %32, %97 : vector<1x8xf32>
    %99 = arith.addf %95, %98 : vector<1x8xf32>
    %c2_43 = arith.constant 2 : index
    %100 = memref.load %arg5[%c2_43] : memref<5xf32, #tpu.memory_space<smem>>
    %101 = vector.broadcast %100 : f32 to vector<1x8xf32>
    %102 = arith.addf %99, %101 : vector<1x8xf32>
    %cst_44 = arith.constant 0.000000e+00 : f32
    %103 = vector.broadcast %cst_44 : f32 to vector<1x8xf32>
    %104 = arith.maximumf %102, %103 : vector<1x8xf32>
    %c3_45 = arith.constant 3 : index
    %c0_46 = arith.constant 0 : index
    %105 = memref.load %arg4[%c3_45, %c0_46] : memref<5x5xf32, #tpu.memory_space<smem>>
    %106 = vector.broadcast %105 : f32 to vector<1x8xf32>
    %107 = arith.mulf %8, %106 : vector<1x8xf32>
    %c3_47 = arith.constant 3 : index
    %c1_48 = arith.constant 1 : index
    %108 = memref.load %arg4[%c3_47, %c1_48] : memref<5x5xf32, #tpu.memory_space<smem>>
    %109 = vector.broadcast %108 : f32 to vector<1x8xf32>
    %110 = arith.mulf %14, %109 : vector<1x8xf32>
    %111 = arith.addf %107, %110 : vector<1x8xf32>
    %c3_49 = arith.constant 3 : index
    %c2_50 = arith.constant 2 : index
    %112 = memref.load %arg4[%c3_49, %c2_50] : memref<5x5xf32, #tpu.memory_space<smem>>
    %113 = vector.broadcast %112 : f32 to vector<1x8xf32>
    %114 = arith.mulf %20, %113 : vector<1x8xf32>
    %115 = arith.addf %111, %114 : vector<1x8xf32>
    %c3_51 = arith.constant 3 : index
    %c3_52 = arith.constant 3 : index
    %116 = memref.load %arg4[%c3_51, %c3_52] : memref<5x5xf32, #tpu.memory_space<smem>>
    %117 = vector.broadcast %116 : f32 to vector<1x8xf32>
    %118 = arith.mulf %26, %117 : vector<1x8xf32>
    %119 = arith.addf %115, %118 : vector<1x8xf32>
    %c3_53 = arith.constant 3 : index
    %c4_54 = arith.constant 4 : index
    %120 = memref.load %arg4[%c3_53, %c4_54] : memref<5x5xf32, #tpu.memory_space<smem>>
    %121 = vector.broadcast %120 : f32 to vector<1x8xf32>
    %122 = arith.mulf %32, %121 : vector<1x8xf32>
    %123 = arith.addf %119, %122 : vector<1x8xf32>
    %c3_55 = arith.constant 3 : index
    %124 = memref.load %arg5[%c3_55] : memref<5xf32, #tpu.memory_space<smem>>
    %125 = vector.broadcast %124 : f32 to vector<1x8xf32>
    %126 = arith.addf %123, %125 : vector<1x8xf32>
    %cst_56 = arith.constant 0.000000e+00 : f32
    %127 = vector.broadcast %cst_56 : f32 to vector<1x8xf32>
    %128 = arith.maximumf %126, %127 : vector<1x8xf32>
    %c4_57 = arith.constant 4 : index
    %c0_58 = arith.constant 0 : index
    %129 = memref.load %arg4[%c4_57, %c0_58] : memref<5x5xf32, #tpu.memory_space<smem>>
    %130 = vector.broadcast %129 : f32 to vector<1x8xf32>
    %131 = arith.mulf %8, %130 : vector<1x8xf32>
    %c4_59 = arith.constant 4 : index
    %c1_60 = arith.constant 1 : index
    %132 = memref.load %arg4[%c4_59, %c1_60] : memref<5x5xf32, #tpu.memory_space<smem>>
    %133 = vector.broadcast %132 : f32 to vector<1x8xf32>
    %134 = arith.mulf %14, %133 : vector<1x8xf32>
    %135 = arith.addf %131, %134 : vector<1x8xf32>
    %c4_61 = arith.constant 4 : index
    %c2_62 = arith.constant 2 : index
    %136 = memref.load %arg4[%c4_61, %c2_62] : memref<5x5xf32, #tpu.memory_space<smem>>
    %137 = vector.broadcast %136 : f32 to vector<1x8xf32>
    %138 = arith.mulf %20, %137 : vector<1x8xf32>
    %139 = arith.addf %135, %138 : vector<1x8xf32>
    %c4_63 = arith.constant 4 : index
    %c3_64 = arith.constant 3 : index
    %140 = memref.load %arg4[%c4_63, %c3_64] : memref<5x5xf32, #tpu.memory_space<smem>>
    %141 = vector.broadcast %140 : f32 to vector<1x8xf32>
    %142 = arith.mulf %26, %141 : vector<1x8xf32>
    %143 = arith.addf %139, %142 : vector<1x8xf32>
    %c4_65 = arith.constant 4 : index
    %c4_66 = arith.constant 4 : index
    %144 = memref.load %arg4[%c4_65, %c4_66] : memref<5x5xf32, #tpu.memory_space<smem>>
    %145 = vector.broadcast %144 : f32 to vector<1x8xf32>
    %146 = arith.mulf %32, %145 : vector<1x8xf32>
    %147 = arith.addf %143, %146 : vector<1x8xf32>
    %c4_67 = arith.constant 4 : index
    %148 = memref.load %arg5[%c4_67] : memref<5xf32, #tpu.memory_space<smem>>
    %149 = vector.broadcast %148 : f32 to vector<1x8xf32>
    %150 = arith.addf %147, %149 : vector<1x8xf32>
    %cst_68 = arith.constant 0.000000e+00 : f32
    %151 = vector.broadcast %cst_68 : f32 to vector<1x8xf32>
    %152 = arith.maximumf %150, %151 : vector<1x8xf32>
    %c0_69 = arith.constant 0 : index
    %c0_70 = arith.constant 0 : index
    %153 = memref.load %arg4[%c0_69, %c0_70] : memref<5x5xf32, #tpu.memory_space<smem>>
    %154 = vector.broadcast %153 : f32 to vector<1x8xf32>
    %155 = arith.mulf %56, %154 : vector<1x8xf32>
    %c0_71 = arith.constant 0 : index
    %c1_72 = arith.constant 1 : index
    %156 = memref.load %arg4[%c0_71, %c1_72] : memref<5x5xf32, #tpu.memory_space<smem>>
    %157 = vector.broadcast %156 : f32 to vector<1x8xf32>
    %158 = arith.mulf %80, %157 : vector<1x8xf32>
    %159 = arith.addf %155, %158 : vector<1x8xf32>
    %c0_73 = arith.constant 0 : index
    %c2_74 = arith.constant 2 : index
    %160 = memref.load %arg4[%c0_73, %c2_74] : memref<5x5xf32, #tpu.memory_space<smem>>
    %161 = vector.broadcast %160 : f32 to vector<1x8xf32>
    %162 = arith.mulf %104, %161 : vector<1x8xf32>
    %163 = arith.addf %159, %162 : vector<1x8xf32>
    %c0_75 = arith.constant 0 : index
    %c3_76 = arith.constant 3 : index
    %164 = memref.load %arg4[%c0_75, %c3_76] : memref<5x5xf32, #tpu.memory_space<smem>>
    %165 = vector.broadcast %164 : f32 to vector<1x8xf32>
    %166 = arith.mulf %128, %165 : vector<1x8xf32>
    %167 = arith.addf %163, %166 : vector<1x8xf32>
    %c0_77 = arith.constant 0 : index
    %c4_78 = arith.constant 4 : index
    %168 = memref.load %arg4[%c0_77, %c4_78] : memref<5x5xf32, #tpu.memory_space<smem>>
    %169 = vector.broadcast %168 : f32 to vector<1x8xf32>
    %170 = arith.mulf %152, %169 : vector<1x8xf32>
    %171 = arith.addf %167, %170 : vector<1x8xf32>
    %c0_79 = arith.constant 0 : index
    %172 = memref.load %arg5[%c0_79] : memref<5xf32, #tpu.memory_space<smem>>
    %173 = vector.broadcast %172 : f32 to vector<1x8xf32>
    %174 = arith.addf %171, %173 : vector<1x8xf32>
    %cst_80 = arith.constant 0.000000e+00 : f32
    %175 = vector.broadcast %cst_80 : f32 to vector<1x8xf32>
    %176 = arith.maximumf %174, %175 : vector<1x8xf32>
    %c1_81 = arith.constant 1 : index
    %c0_82 = arith.constant 0 : index
    %177 = memref.load %arg4[%c1_81, %c0_82] : memref<5x5xf32, #tpu.memory_space<smem>>
    %178 = vector.broadcast %177 : f32 to vector<1x8xf32>
    %179 = arith.mulf %56, %178 : vector<1x8xf32>
    %c1_83 = arith.constant 1 : index
    %c1_84 = arith.constant 1 : index
    %180 = memref.load %arg4[%c1_83, %c1_84] : memref<5x5xf32, #tpu.memory_space<smem>>
    %181 = vector.broadcast %180 : f32 to vector<1x8xf32>
    %182 = arith.mulf %80, %181 : vector<1x8xf32>
    %183 = arith.addf %179, %182 : vector<1x8xf32>
    %c1_85 = arith.constant 1 : index
    %c2_86 = arith.constant 2 : index
    %184 = memref.load %arg4[%c1_85, %c2_86] : memref<5x5xf32, #tpu.memory_space<smem>>
    %185 = vector.broadcast %184 : f32 to vector<1x8xf32>
    %186 = arith.mulf %104, %185 : vector<1x8xf32>
    %187 = arith.addf %183, %186 : vector<1x8xf32>
    %c1_87 = arith.constant 1 : index
    %c3_88 = arith.constant 3 : index
    %188 = memref.load %arg4[%c1_87, %c3_88] : memref<5x5xf32, #tpu.memory_space<smem>>
    %189 = vector.broadcast %188 : f32 to vector<1x8xf32>
    %190 = arith.mulf %128, %189 : vector<1x8xf32>
    %191 = arith.addf %187, %190 : vector<1x8xf32>
    %c1_89 = arith.constant 1 : index
    %c4_90 = arith.constant 4 : index
    %192 = memref.load %arg4[%c1_89, %c4_90] : memref<5x5xf32, #tpu.memory_space<smem>>
    %193 = vector.broadcast %192 : f32 to vector<1x8xf32>
    %194 = arith.mulf %152, %193 : vector<1x8xf32>
    %195 = arith.addf %191, %194 : vector<1x8xf32>
    %c1_91 = arith.constant 1 : index
    %196 = memref.load %arg5[%c1_91] : memref<5xf32, #tpu.memory_space<smem>>
    %197 = vector.broadcast %196 : f32 to vector<1x8xf32>
    %198 = arith.addf %195, %197 : vector<1x8xf32>
    %cst_92 = arith.constant 0.000000e+00 : f32
    %199 = vector.broadcast %cst_92 : f32 to vector<1x8xf32>
    %200 = arith.maximumf %198, %199 : vector<1x8xf32>
    %c2_93 = arith.constant 2 : index
    %c0_94 = arith.constant 0 : index
    %201 = memref.load %arg4[%c2_93, %c0_94] : memref<5x5xf32, #tpu.memory_space<smem>>
    %202 = vector.broadcast %201 : f32 to vector<1x8xf32>
    %203 = arith.mulf %56, %202 : vector<1x8xf32>
    %c2_95 = arith.constant 2 : index
    %c1_96 = arith.constant 1 : index
    %204 = memref.load %arg4[%c2_95, %c1_96] : memref<5x5xf32, #tpu.memory_space<smem>>
    %205 = vector.broadcast %204 : f32 to vector<1x8xf32>
    %206 = arith.mulf %80, %205 : vector<1x8xf32>
    %207 = arith.addf %203, %206 : vector<1x8xf32>
    %c2_97 = arith.constant 2 : index
    %c2_98 = arith.constant 2 : index
    %208 = memref.load %arg4[%c2_97, %c2_98] : memref<5x5xf32, #tpu.memory_space<smem>>
    %209 = vector.broadcast %208 : f32 to vector<1x8xf32>
    %210 = arith.mulf %104, %209 : vector<1x8xf32>
    %211 = arith.addf %207, %210 : vector<1x8xf32>
    %c2_99 = arith.constant 2 : index
    %c3_100 = arith.constant 3 : index
    %212 = memref.load %arg4[%c2_99, %c3_100] : memref<5x5xf32, #tpu.memory_space<smem>>
    %213 = vector.broadcast %212 : f32 to vector<1x8xf32>
    %214 = arith.mulf %128, %213 : vector<1x8xf32>
    %215 = arith.addf %211, %214 : vector<1x8xf32>
    %c2_101 = arith.constant 2 : index
    %c4_102 = arith.constant 4 : index
    %216 = memref.load %arg4[%c2_101, %c4_102] : memref<5x5xf32, #tpu.memory_space<smem>>
    %217 = vector.broadcast %216 : f32 to vector<1x8xf32>
    %218 = arith.mulf %152, %217 : vector<1x8xf32>
    %219 = arith.addf %215, %218 : vector<1x8xf32>
    %c2_103 = arith.constant 2 : index
    %220 = memref.load %arg5[%c2_103] : memref<5xf32, #tpu.memory_space<smem>>
    %221 = vector.broadcast %220 : f32 to vector<1x8xf32>
    %222 = arith.addf %219, %221 : vector<1x8xf32>
    %cst_104 = arith.constant 0.000000e+00 : f32
    %223 = vector.broadcast %cst_104 : f32 to vector<1x8xf32>
    %224 = arith.maximumf %222, %223 : vector<1x8xf32>
    %c3_105 = arith.constant 3 : index
    %c0_106 = arith.constant 0 : index
    %225 = memref.load %arg4[%c3_105, %c0_106] : memref<5x5xf32, #tpu.memory_space<smem>>
    %226 = vector.broadcast %225 : f32 to vector<1x8xf32>
    %227 = arith.mulf %56, %226 : vector<1x8xf32>
    %c3_107 = arith.constant 3 : index
    %c1_108 = arith.constant 1 : index
    %228 = memref.load %arg4[%c3_107, %c1_108] : memref<5x5xf32, #tpu.memory_space<smem>>
    %229 = vector.broadcast %228 : f32 to vector<1x8xf32>
    %230 = arith.mulf %80, %229 : vector<1x8xf32>
    %231 = arith.addf %227, %230 : vector<1x8xf32>
    %c3_109 = arith.constant 3 : index
    %c2_110 = arith.constant 2 : index
    %232 = memref.load %arg4[%c3_109, %c2_110] : memref<5x5xf32, #tpu.memory_space<smem>>
    %233 = vector.broadcast %232 : f32 to vector<1x8xf32>
    %234 = arith.mulf %104, %233 : vector<1x8xf32>
    %235 = arith.addf %231, %234 : vector<1x8xf32>
    %c3_111 = arith.constant 3 : index
    %c3_112 = arith.constant 3 : index
    %236 = memref.load %arg4[%c3_111, %c3_112] : memref<5x5xf32, #tpu.memory_space<smem>>
    %237 = vector.broadcast %236 : f32 to vector<1x8xf32>
    %238 = arith.mulf %128, %237 : vector<1x8xf32>
    %239 = arith.addf %235, %238 : vector<1x8xf32>
    %c3_113 = arith.constant 3 : index
    %c4_114 = arith.constant 4 : index
    %240 = memref.load %arg4[%c3_113, %c4_114] : memref<5x5xf32, #tpu.memory_space<smem>>
    %241 = vector.broadcast %240 : f32 to vector<1x8xf32>
    %242 = arith.mulf %152, %241 : vector<1x8xf32>
    %243 = arith.addf %239, %242 : vector<1x8xf32>
    %c3_115 = arith.constant 3 : index
    %244 = memref.load %arg5[%c3_115] : memref<5xf32, #tpu.memory_space<smem>>
    %245 = vector.broadcast %244 : f32 to vector<1x8xf32>
    %246 = arith.addf %243, %245 : vector<1x8xf32>
    %cst_116 = arith.constant 0.000000e+00 : f32
    %247 = vector.broadcast %cst_116 : f32 to vector<1x8xf32>
    %248 = arith.maximumf %246, %247 : vector<1x8xf32>
    %c4_117 = arith.constant 4 : index
    %c0_118 = arith.constant 0 : index
    %249 = memref.load %arg4[%c4_117, %c0_118] : memref<5x5xf32, #tpu.memory_space<smem>>
    %250 = vector.broadcast %249 : f32 to vector<1x8xf32>
    %251 = arith.mulf %56, %250 : vector<1x8xf32>
    %c4_119 = arith.constant 4 : index
    %c1_120 = arith.constant 1 : index
    %252 = memref.load %arg4[%c4_119, %c1_120] : memref<5x5xf32, #tpu.memory_space<smem>>
    %253 = vector.broadcast %252 : f32 to vector<1x8xf32>
    %254 = arith.mulf %80, %253 : vector<1x8xf32>
    %255 = arith.addf %251, %254 : vector<1x8xf32>
    %c4_121 = arith.constant 4 : index
    %c2_122 = arith.constant 2 : index
    %256 = memref.load %arg4[%c4_121, %c2_122] : memref<5x5xf32, #tpu.memory_space<smem>>
    %257 = vector.broadcast %256 : f32 to vector<1x8xf32>
    %258 = arith.mulf %104, %257 : vector<1x8xf32>
    %259 = arith.addf %255, %258 : vector<1x8xf32>
    %c4_123 = arith.constant 4 : index
    %c3_124 = arith.constant 3 : index
    %260 = memref.load %arg4[%c4_123, %c3_124] : memref<5x5xf32, #tpu.memory_space<smem>>
    %261 = vector.broadcast %260 : f32 to vector<1x8xf32>
    %262 = arith.mulf %128, %261 : vector<1x8xf32>
    %263 = arith.addf %259, %262 : vector<1x8xf32>
    %c4_125 = arith.constant 4 : index
    %c4_126 = arith.constant 4 : index
    %264 = memref.load %arg4[%c4_125, %c4_126] : memref<5x5xf32, #tpu.memory_space<smem>>
    %265 = vector.broadcast %264 : f32 to vector<1x8xf32>
    %266 = arith.mulf %152, %265 : vector<1x8xf32>
    %267 = arith.addf %263, %266 : vector<1x8xf32>
    %c4_127 = arith.constant 4 : index
    %268 = memref.load %arg5[%c4_127] : memref<5xf32, #tpu.memory_space<smem>>
    %269 = vector.broadcast %268 : f32 to vector<1x8xf32>
    %270 = arith.addf %267, %269 : vector<1x8xf32>
    %cst_128 = arith.constant 0.000000e+00 : f32
    %271 = vector.broadcast %cst_128 : f32 to vector<1x8xf32>
    %272 = arith.maximumf %270, %271 : vector<1x8xf32>
    %c0_129 = arith.constant 0 : index
    %c0_130 = arith.constant 0 : index
    %273 = memref.load %arg4[%c0_129, %c0_130] : memref<5x5xf32, #tpu.memory_space<smem>>
    %274 = vector.broadcast %273 : f32 to vector<1x8xf32>
    %275 = arith.mulf %176, %274 : vector<1x8xf32>
    %c0_131 = arith.constant 0 : index
    %c1_132 = arith.constant 1 : index
    %276 = memref.load %arg4[%c0_131, %c1_132] : memref<5x5xf32, #tpu.memory_space<smem>>
    %277 = vector.broadcast %276 : f32 to vector<1x8xf32>
    %278 = arith.mulf %200, %277 : vector<1x8xf32>
    %279 = arith.addf %275, %278 : vector<1x8xf32>
    %c0_133 = arith.constant 0 : index
    %c2_134 = arith.constant 2 : index
    %280 = memref.load %arg4[%c0_133, %c2_134] : memref<5x5xf32, #tpu.memory_space<smem>>
    %281 = vector.broadcast %280 : f32 to vector<1x8xf32>
    %282 = arith.mulf %224, %281 : vector<1x8xf32>
    %283 = arith.addf %279, %282 : vector<1x8xf32>
    %c0_135 = arith.constant 0 : index
    %c3_136 = arith.constant 3 : index
    %284 = memref.load %arg4[%c0_135, %c3_136] : memref<5x5xf32, #tpu.memory_space<smem>>
    %285 = vector.broadcast %284 : f32 to vector<1x8xf32>
    %286 = arith.mulf %248, %285 : vector<1x8xf32>
    %287 = arith.addf %283, %286 : vector<1x8xf32>
    %c0_137 = arith.constant 0 : index
    %c4_138 = arith.constant 4 : index
    %288 = memref.load %arg4[%c0_137, %c4_138] : memref<5x5xf32, #tpu.memory_space<smem>>
    %289 = vector.broadcast %288 : f32 to vector<1x8xf32>
    %290 = arith.mulf %272, %289 : vector<1x8xf32>
    %291 = arith.addf %287, %290 : vector<1x8xf32>
    %c0_139 = arith.constant 0 : index
    %292 = memref.load %arg5[%c0_139] : memref<5xf32, #tpu.memory_space<smem>>
    %293 = vector.broadcast %292 : f32 to vector<1x8xf32>
    %294 = arith.addf %291, %293 : vector<1x8xf32>
    %cst_140 = arith.constant 0.000000e+00 : f32
    %295 = vector.broadcast %cst_140 : f32 to vector<1x8xf32>
    %296 = arith.maximumf %294, %295 : vector<1x8xf32>
    %c1_141 = arith.constant 1 : index
    %c0_142 = arith.constant 0 : index
    %297 = memref.load %arg4[%c1_141, %c0_142] : memref<5x5xf32, #tpu.memory_space<smem>>
    %298 = vector.broadcast %297 : f32 to vector<1x8xf32>
    %299 = arith.mulf %176, %298 : vector<1x8xf32>
    %c1_143 = arith.constant 1 : index
    %c1_144 = arith.constant 1 : index
    %300 = memref.load %arg4[%c1_143, %c1_144] : memref<5x5xf32, #tpu.memory_space<smem>>
    %301 = vector.broadcast %300 : f32 to vector<1x8xf32>
    %302 = arith.mulf %200, %301 : vector<1x8xf32>
    %303 = arith.addf %299, %302 : vector<1x8xf32>
    %c1_145 = arith.constant 1 : index
    %c2_146 = arith.constant 2 : index
    %304 = memref.load %arg4[%c1_145, %c2_146] : memref<5x5xf32, #tpu.memory_space<smem>>
    %305 = vector.broadcast %304 : f32 to vector<1x8xf32>
    %306 = arith.mulf %224, %305 : vector<1x8xf32>
    %307 = arith.addf %303, %306 : vector<1x8xf32>
    %c1_147 = arith.constant 1 : index
    %c3_148 = arith.constant 3 : index
    %308 = memref.load %arg4[%c1_147, %c3_148] : memref<5x5xf32, #tpu.memory_space<smem>>
    %309 = vector.broadcast %308 : f32 to vector<1x8xf32>
    %310 = arith.mulf %248, %309 : vector<1x8xf32>
    %311 = arith.addf %307, %310 : vector<1x8xf32>
    %c1_149 = arith.constant 1 : index
    %c4_150 = arith.constant 4 : index
    %312 = memref.load %arg4[%c1_149, %c4_150] : memref<5x5xf32, #tpu.memory_space<smem>>
    %313 = vector.broadcast %312 : f32 to vector<1x8xf32>
    %314 = arith.mulf %272, %313 : vector<1x8xf32>
    %315 = arith.addf %311, %314 : vector<1x8xf32>
    %c1_151 = arith.constant 1 : index
    %316 = memref.load %arg5[%c1_151] : memref<5xf32, #tpu.memory_space<smem>>
    %317 = vector.broadcast %316 : f32 to vector<1x8xf32>
    %318 = arith.addf %315, %317 : vector<1x8xf32>
    %cst_152 = arith.constant 0.000000e+00 : f32
    %319 = vector.broadcast %cst_152 : f32 to vector<1x8xf32>
    %320 = arith.maximumf %318, %319 : vector<1x8xf32>
    %c2_153 = arith.constant 2 : index
    %c0_154 = arith.constant 0 : index
    %321 = memref.load %arg4[%c2_153, %c0_154] : memref<5x5xf32, #tpu.memory_space<smem>>
    %322 = vector.broadcast %321 : f32 to vector<1x8xf32>
    %323 = arith.mulf %176, %322 : vector<1x8xf32>
    %c2_155 = arith.constant 2 : index
    %c1_156 = arith.constant 1 : index
    %324 = memref.load %arg4[%c2_155, %c1_156] : memref<5x5xf32, #tpu.memory_space<smem>>
    %325 = vector.broadcast %324 : f32 to vector<1x8xf32>
    %326 = arith.mulf %200, %325 : vector<1x8xf32>
    %327 = arith.addf %323, %326 : vector<1x8xf32>
    %c2_157 = arith.constant 2 : index
    %c2_158 = arith.constant 2 : index
    %328 = memref.load %arg4[%c2_157, %c2_158] : memref<5x5xf32, #tpu.memory_space<smem>>
    %329 = vector.broadcast %328 : f32 to vector<1x8xf32>
    %330 = arith.mulf %224, %329 : vector<1x8xf32>
    %331 = arith.addf %327, %330 : vector<1x8xf32>
    %c2_159 = arith.constant 2 : index
    %c3_160 = arith.constant 3 : index
    %332 = memref.load %arg4[%c2_159, %c3_160] : memref<5x5xf32, #tpu.memory_space<smem>>
    %333 = vector.broadcast %332 : f32 to vector<1x8xf32>
    %334 = arith.mulf %248, %333 : vector<1x8xf32>
    %335 = arith.addf %331, %334 : vector<1x8xf32>
    %c2_161 = arith.constant 2 : index
    %c4_162 = arith.constant 4 : index
    %336 = memref.load %arg4[%c2_161, %c4_162] : memref<5x5xf32, #tpu.memory_space<smem>>
    %337 = vector.broadcast %336 : f32 to vector<1x8xf32>
    %338 = arith.mulf %272, %337 : vector<1x8xf32>
    %339 = arith.addf %335, %338 : vector<1x8xf32>
    %c2_163 = arith.constant 2 : index
    %340 = memref.load %arg5[%c2_163] : memref<5xf32, #tpu.memory_space<smem>>
    %341 = vector.broadcast %340 : f32 to vector<1x8xf32>
    %342 = arith.addf %339, %341 : vector<1x8xf32>
    %cst_164 = arith.constant 0.000000e+00 : f32
    %343 = vector.broadcast %cst_164 : f32 to vector<1x8xf32>
    %344 = arith.maximumf %342, %343 : vector<1x8xf32>
    %c3_165 = arith.constant 3 : index
    %c0_166 = arith.constant 0 : index
    %345 = memref.load %arg4[%c3_165, %c0_166] : memref<5x5xf32, #tpu.memory_space<smem>>
    %346 = vector.broadcast %345 : f32 to vector<1x8xf32>
    %347 = arith.mulf %176, %346 : vector<1x8xf32>
    %c3_167 = arith.constant 3 : index
    %c1_168 = arith.constant 1 : index
    %348 = memref.load %arg4[%c3_167, %c1_168] : memref<5x5xf32, #tpu.memory_space<smem>>
    %349 = vector.broadcast %348 : f32 to vector<1x8xf32>
    %350 = arith.mulf %200, %349 : vector<1x8xf32>
    %351 = arith.addf %347, %350 : vector<1x8xf32>
    %c3_169 = arith.constant 3 : index
    %c2_170 = arith.constant 2 : index
    %352 = memref.load %arg4[%c3_169, %c2_170] : memref<5x5xf32, #tpu.memory_space<smem>>
    %353 = vector.broadcast %352 : f32 to vector<1x8xf32>
    %354 = arith.mulf %224, %353 : vector<1x8xf32>
    %355 = arith.addf %351, %354 : vector<1x8xf32>
    %c3_171 = arith.constant 3 : index
    %c3_172 = arith.constant 3 : index
    %356 = memref.load %arg4[%c3_171, %c3_172] : memref<5x5xf32, #tpu.memory_space<smem>>
    %357 = vector.broadcast %356 : f32 to vector<1x8xf32>
    %358 = arith.mulf %248, %357 : vector<1x8xf32>
    %359 = arith.addf %355, %358 : vector<1x8xf32>
    %c3_173 = arith.constant 3 : index
    %c4_174 = arith.constant 4 : index
    %360 = memref.load %arg4[%c3_173, %c4_174] : memref<5x5xf32, #tpu.memory_space<smem>>
    %361 = vector.broadcast %360 : f32 to vector<1x8xf32>
    %362 = arith.mulf %272, %361 : vector<1x8xf32>
    %363 = arith.addf %359, %362 : vector<1x8xf32>
    %c3_175 = arith.constant 3 : index
    %364 = memref.load %arg5[%c3_175] : memref<5xf32, #tpu.memory_space<smem>>
    %365 = vector.broadcast %364 : f32 to vector<1x8xf32>
    %366 = arith.addf %363, %365 : vector<1x8xf32>
    %cst_176 = arith.constant 0.000000e+00 : f32
    %367 = vector.broadcast %cst_176 : f32 to vector<1x8xf32>
    %368 = arith.maximumf %366, %367 : vector<1x8xf32>
    %c4_177 = arith.constant 4 : index
    %c0_178 = arith.constant 0 : index
    %369 = memref.load %arg4[%c4_177, %c0_178] : memref<5x5xf32, #tpu.memory_space<smem>>
    %370 = vector.broadcast %369 : f32 to vector<1x8xf32>
    %371 = arith.mulf %176, %370 : vector<1x8xf32>
    %c4_179 = arith.constant 4 : index
    %c1_180 = arith.constant 1 : index
    %372 = memref.load %arg4[%c4_179, %c1_180] : memref<5x5xf32, #tpu.memory_space<smem>>
    %373 = vector.broadcast %372 : f32 to vector<1x8xf32>
    %374 = arith.mulf %200, %373 : vector<1x8xf32>
    %375 = arith.addf %371, %374 : vector<1x8xf32>
    %c4_181 = arith.constant 4 : index
    %c2_182 = arith.constant 2 : index
    %376 = memref.load %arg4[%c4_181, %c2_182] : memref<5x5xf32, #tpu.memory_space<smem>>
    %377 = vector.broadcast %376 : f32 to vector<1x8xf32>
    %378 = arith.mulf %224, %377 : vector<1x8xf32>
    %379 = arith.addf %375, %378 : vector<1x8xf32>
    %c4_183 = arith.constant 4 : index
    %c3_184 = arith.constant 3 : index
    %380 = memref.load %arg4[%c4_183, %c3_184] : memref<5x5xf32, #tpu.memory_space<smem>>
    %381 = vector.broadcast %380 : f32 to vector<1x8xf32>
    %382 = arith.mulf %248, %381 : vector<1x8xf32>
    %383 = arith.addf %379, %382 : vector<1x8xf32>
    %c4_185 = arith.constant 4 : index
    %c4_186 = arith.constant 4 : index
    %384 = memref.load %arg4[%c4_185, %c4_186] : memref<5x5xf32, #tpu.memory_space<smem>>
    %385 = vector.broadcast %384 : f32 to vector<1x8xf32>
    %386 = arith.mulf %272, %385 : vector<1x8xf32>
    %387 = arith.addf %383, %386 : vector<1x8xf32>
    %c4_187 = arith.constant 4 : index
    %388 = memref.load %arg5[%c4_187] : memref<5xf32, #tpu.memory_space<smem>>
    %389 = vector.broadcast %388 : f32 to vector<1x8xf32>
    %390 = arith.addf %387, %389 : vector<1x8xf32>
    %cst_188 = arith.constant 0.000000e+00 : f32
    %391 = vector.broadcast %cst_188 : f32 to vector<1x8xf32>
    %392 = arith.maximumf %390, %391 : vector<1x8xf32>
    %c0_189 = arith.constant 0 : index
    %393 = memref.load %arg6[%c0_189] : memref<5xf32, #tpu.memory_space<smem>>
    %394 = vector.broadcast %393 : f32 to vector<1x8xf32>
    %395 = arith.mulf %296, %394 : vector<1x8xf32>
    %c1_190 = arith.constant 1 : index
    %396 = memref.load %arg6[%c1_190] : memref<5xf32, #tpu.memory_space<smem>>
    %397 = vector.broadcast %396 : f32 to vector<1x8xf32>
    %398 = arith.mulf %320, %397 : vector<1x8xf32>
    %399 = arith.addf %395, %398 : vector<1x8xf32>
    %c2_191 = arith.constant 2 : index
    %400 = memref.load %arg6[%c2_191] : memref<5xf32, #tpu.memory_space<smem>>
    %401 = vector.broadcast %400 : f32 to vector<1x8xf32>
    %402 = arith.mulf %344, %401 : vector<1x8xf32>
    %403 = arith.addf %399, %402 : vector<1x8xf32>
    %c3_192 = arith.constant 3 : index
    %404 = memref.load %arg6[%c3_192] : memref<5xf32, #tpu.memory_space<smem>>
    %405 = vector.broadcast %404 : f32 to vector<1x8xf32>
    %406 = arith.mulf %368, %405 : vector<1x8xf32>
    %407 = arith.addf %403, %406 : vector<1x8xf32>
    %c4_193 = arith.constant 4 : index
    %408 = memref.load %arg6[%c4_193] : memref<5xf32, #tpu.memory_space<smem>>
    %409 = vector.broadcast %408 : f32 to vector<1x8xf32>
    %410 = arith.mulf %392, %409 : vector<1x8xf32>
    %411 = arith.addf %407, %410 : vector<1x8xf32>
    %c0_194 = arith.constant 0 : index
    %412 = memref.load %arg7[%c0_194] : memref<1xf32, #tpu.memory_space<smem>>
    %413 = vector.broadcast %412 : f32 to vector<1x8xf32>
    %414 = arith.addf %411, %413 : vector<1x8xf32>
    %cst_195 = arith.constant 0.000000e+00 : f32
    %415 = vector.broadcast %cst_195 : f32 to vector<1x8xf32>
    %416 = arith.maximumf %414, %415 : vector<1x8xf32>
    %c0_196 = arith.constant 0 : index
    %c0_197 = arith.constant 0 : index
    %417 = vector.load %arg8[%c0_196, %c0_197] : memref<1x8xf32, #tpu.memory_space<vmem>>, vector<1x8xf32>
    tpu.vector_store %arg8[%c0_196, %c0_197], %416 {strides = array<i32>} : memref<1x8xf32, #tpu.memory_space<vmem>>, vector<1x8xf32>,
    return
  }
  func.func @transform_0(%arg0: i32) -> (i32, i32) {
    %c0_i32 = arith.constant 0 : i32
    %c0_i32_0 = arith.constant 0 : i32
    return %arg0, %c0_i32 : i32, i32
  }
  func.func @transform_1(%arg0: i32) -> (i32, i32) {
    %c0_i32 = arith.constant 0 : i32
    %c0_i32_0 = arith.constant 0 : i32
    %c0_i32_1 = arith.constant 0 : i32
    return %c0_i32, %c0_i32_0 : i32, i32
  }
  func.func @transform_2(%arg0: i32) -> i32 {
    %c0_i32 = arith.constant 0 : i32
    %c0_i32_0 = arith.constant 0 : i32
    return %c0_i32 : i32
  }
  func.func @transform_3(%arg0: i32) -> (i32, i32) {
    %c0_i32 = arith.constant 0 : i32
    %c0_i32_0 = arith.constant 0 : i32
    %c0_i32_1 = arith.constant 0 : i32
    return %c0_i32, %c0_i32_0 : i32, i32
  }
  func.func @transform_4(%arg0: i32) -> i32 {
    %c0_i32 = arith.constant 0 : i32
    %c0_i32_0 = arith.constant 0 : i32
    return %c0_i32 : i32
  }
  func.func @transform_5(%arg0: i32) -> i32 {
    %c0_i32 = arith.constant 0 : i32
    %c0_i32_0 = arith.constant 0 : i32
    return %c0_i32 : i32
  }
  func.func @transform_6(%arg0: i32) -> i32 {
    %c0_i32 = arith.constant 0 : i32
    %c0_i32_0 = arith.constant 0 : i32
    return %c0_i32 : i32
  }
  func.func @transform_7(%arg0: i32) -> (i32, i32) {
    %c0_i32 = arith.constant 0 : i32
    %c0_i32_0 = arith.constant 0 : i32
    return %c0_i32, %arg0 : i32, i32
  }
}

</mosaic_0001>

<bundles_post_ra>
// kernel: flex_encoding_forward.1
= control target key start
LH: loop header
LB: loop body
LE: loop exit
PB: predicated region body
PF: predicated region fallthrough
CT: control target
= control target key end

     0   :  { %s1453_s0 = inlined_call_operand.hbm [shape: f32[8,50], index: 0, kind: input, shape index: {}]   ;;  %s1454_s1 = inlined_call_operand.hbm [shape: f32[5,50], index: 1, kind: input, shape index: {}]   ;;  %s1455_s2 = inlined_call_operand.vmem [shape: f32[5], index: 2, kind: input, shape index: {}]   ;;  %s1456_s3 = inlined_call_operand.vmem [shape: f32[5,5], index: 3, kind: input, shape index: {}]   ;;  %s1457_s4 = inlined_call_operand.vmem [shape: f32[5], index: 4, kind: input, shape index: {}]   ;;  %s1458_s5 = inlined_call_operand.vmem [shape: f32[5], index: 5, kind: input, shape index: {}]   ;;  %s1459_s6 = inlined_call_operand.<no memory space> [shape: f32[1], index: 6, kind: input, shape index: {}]   ;;  %s1460_s7 = inlined_call_operand.vmem [shape: f32[1,8], index: 7, kind: output, shape index: {}]  }
   0x1   :  { %1461 = sst [smem:[#allocation20_spill]] %s1459_s6 }
   0x2   :  { %1462 = sst [smem:[#allocation21_spill]] %s1460_s7 }
   0x3   :  { %13 = vsyncpa [#allocation4], 0 }
   0x4   :  { %14 = vsyncpa [#allocation7], 0 }
   0x5   :  { %15 = vsyncpa [#allocation5], 0 }
   0x6   :  { %16 = vsyncpa [#allocation10], 0  ;;  %s54_s26 = sshll.u32 %s1456_s3, 4  ;;  %s55_s26 = int_to_ptr.vmem [resolvable:$true] %s54_s26 }
   0x7   :  { %17 = vsyncpa [#allocation13], 0  ;;  %s988_s27 = scalar_lea.vmem %s55_s26, 128  ;;  %p993_p1 = scmp.lt.s32.totalorder %s55_s26, %s55_s26 }
   0x8   :  { %p989_p0 = scmp.ne.s32.totalorder %s55_s26, %s988_s27  ;;  %p994_p2 = scmp.lt.s32.totalorder %s988_s27, %s988_s27 }
   0xa   :  { %p995_p3 = por %p994_p2, %p993_p1 }
   0xc   :  { %p996_p4 = pnand %p995_p3, %p989_p0 }
   0xe   :  { %999 = shalt.err (!%p996_p4)
}
   0xf   :  { %s1090_s28 = smov [#allocation9]   ;;  %s1091_s29 = smov [#allocation3]  }
  0x10   :  { %57 = dma.vmem_to_smem %s55_s26, 128, %s1090_s28, [#allocation10]  }
  0x11   :  { %s24_s30 = sshll.u32 %s1091_s29, 4  ;;  %s1092_s8 = smov [#allocation6]   ;;  %s25_s30 = int_to_ptr.vmem [resolvable:$true] %s24_s30 }
  0x12   :  { %s34_s9 = sshll.u32 %s1092_s8, 4  ;;  %s1000_s3 = scalar_lea.hbm %s1453_s0, 128  ;;  %s35_s9 = int_to_ptr.vmem [resolvable:$true] %s34_s9 }
  0x13   :  { %p1001_p5 = scmp.ne.s32.totalorder %s1453_s0, %s1000_s3  ;;  %p1004_p6 = scmp.lt.u32.totalorder %s1000_s3, %s1453_s0 }
  0x15   :  { %p1006_p7 = pnand %p1004_p6, %p1001_p5 }
  0x17   :  { %1009 = shalt.err (!%p1006_p7)
}
  0x18   :  { %s1010_s16 = scalar_lea.vmem %s25_s30, 128  ;;  %p1015_p9 = scmp.lt.s32.totalorder %s25_s30, %s25_s30 }
  0x19   :  { %p1011_p8 = scmp.ne.s32.totalorder %s25_s30, %s1010_s16  ;;  %p1016_p10 = scmp.lt.s32.totalorder %s1010_s16, %s1010_s16 }
  0x1b   :  { %p1017_p11 = por %p1016_p10, %p1015_p9 }
  0x1d   :  { %p1018_p12 = pnand %p1017_p11, %p1011_p8 }
  0x1f   :  { %1021 = shalt.err (!%p1018_p12)
}
  0x20   :  { %27 = dma.hbm_to_vmem [thread:$0]  %s1453_s0, 128, %s25_s30, [#allocation4]  }
  0x21   :  { %s44_s21 = sshll.u32 %s1455_s2, 4  ;;  %s1022_s24 = scalar_lea.hbm %s1454_s1, 128  ;;  %s45_s21 = int_to_ptr.vmem [resolvable:$true] %s44_s21 }
  0x22   :  { %p1023_p13 = scmp.ne.s32.totalorder %s1454_s1, %s1022_s24  ;;  %p1026_p0 = scmp.lt.u32.totalorder %s1022_s24, %s1454_s1 }
  0x24   :  { %p1028_p1 = pnand %p1026_p0, %p1023_p13 }
  0x26   :  { %1031 = shalt.err (!%p1028_p1)
}
  0x27   :  { %s1032_s0 = scalar_lea.vmem %s35_s9, 128  ;;  %p1037_p3 = scmp.lt.s32.totalorder %s35_s9, %s35_s9 }
  0x28   :  { %p1033_p2 = scmp.ne.s32.totalorder %s35_s9, %s1032_s0  ;;  %p1038_p4 = scmp.lt.s32.totalorder %s1032_s0, %s1032_s0 }
  0x2a   :  { %p1039_p5 = por %p1038_p4, %p1037_p3 }
  0x2c   :  { %p1040_p6 = pnand %p1039_p5, %p1033_p2 }
  0x2e   :  { %1043 = shalt.err (!%p1040_p6)
}
  0x2f   :  { %37 = dma.hbm_to_vmem [thread:$0]  %s1454_s1, 128, %s35_s9, [#allocation7]  }
  0x30   :  { %s1044_s30 = scalar_lea.vmem %s45_s21, 16  ;;  %p1049_p8 = scmp.lt.s32.totalorder %s45_s21, %s45_s21 }
  0x31   :  { %p1045_p7 = scmp.ne.s32.totalorder %s45_s21, %s1044_s30  ;;  %p1050_p9 = scmp.lt.s32.totalorder %s1044_s30, %s1044_s30 }
  0x33   :  { %p1051_p10 = por %p1050_p9, %p1049_p8 }
  0x35   :  { %p1052_p11 = pnand %p1051_p10, %p1045_p7 }
  0x37   :  { %1055 = shalt.err (!%p1052_p11)
}
  0x38   :  { %s1093_s8 = smov [#allocation8]   ;;  %s64_s3 = sshll.u32 %s1457_s4, 4  ;;  %s65_s3 = int_to_ptr.vmem [resolvable:$true] %s64_s3 }
  0x39   :  { %47 = dma.vmem_to_smem %s45_s21, 16, %s1093_s8, [#allocation5]  }
  0x3a   :  { %s74_s14 = sshll.u32 %s1458_s5, 4  ;;  %s1056_s1 = scalar_lea.vmem %s65_s3, 16  ;;  %s75_s14 = int_to_ptr.vmem [resolvable:$true] %s74_s14 }
  0x3b   :  { %p1057_p12 = scmp.ne.s32.totalorder %s65_s3, %s1056_s1  ;;  %p1061_p13 = scmp.lt.s32.totalorder %s65_s3, %s65_s3 }
  0x3c   :  { %p1062_p0 = scmp.lt.s32.totalorder %s1056_s1, %s1056_s1 }
  0x3e   :  { %p1063_p1 = por %p1062_p0, %p1061_p13 }
  0x40   :  { %p1064_p2 = pnand %p1063_p1, %p1057_p12 }
  0x42   :  { %1067 = shalt.err (!%p1064_p2)
}
  0x43   :  { %s1094_s9 = smov [#allocation11]   ;;  %s1068_s15 = scalar_lea.vmem %s75_s14, 16 }
  0x44   :  { %67 = dma.vmem_to_smem %s65_s3, 16, %s1094_s9, [#allocation10]  }
  0x45   :  { %p1069_p3 = scmp.ne.s32.totalorder %s75_s14, %s1068_s15  ;;  %p1073_p4 = scmp.lt.s32.totalorder %s75_s14, %s75_s14 }
  0x46   :  { %p1074_p5 = scmp.lt.s32.totalorder %s1068_s15, %s1068_s15 }
  0x48   :  { %p1075_p6 = por %p1074_p5, %p1073_p4 }
  0x4a   :  { %p1076_p7 = pnand %p1075_p6, %p1069_p3 }
  0x4c   :  { %1079 = shalt.err (!%p1076_p7)
}
  0x4d   :  { %s1095_s4 = smov [#allocation12]  }
  0x4e   :  { %77 = dma.vmem_to_smem %s75_s14, 16, %s1095_s4, [#allocation13]  }
  0x4f   :  { %1080 = dma.done.wait [#allocation4], 128  }
  0x50   :  { %1081 = vsyncadd [#allocation4], 4294967168 }
  0x51   :  { %1082 = dma.done.wait [#allocation7], 128  }
  0x52   :  { %1083 = vsyncadd [#allocation7], 4294967168 }
  0x53   :  { %1084 = dma.done.wait [#allocation5], 16  }
  0x54   :  { %1085 = vsyncadd [#allocation5], 4294967280 }
  0x55   :  { %1086 = dma.done.wait [#allocation10], 144  }
  0x56   :  { %1087 = vsyncadd [#allocation10], 4294967152 }
  0x57   :  { %1088 = dma.done.wait [#allocation13], 16  }
  0x58   :  { %1089 = vsyncadd [#allocation13], 4294967280 }
  0x59   :  { %98 = sfence }
  0x5a   :  { %v100_v0 = vld [vmem:[#allocation3] sm:$0xff]  ;;  %vm101_vm0 = vcmask 408576   ;;  %v99_v1 = vld [vmem:[#allocation6] sm:$0x1f]  ;;  %v1096_v2 = vmov 0.0   ;;  %vm1097_vm1 = vmmov 0  }
  0x5b   :  { %956 = vmatprep.subr.mxu0 %v1096_v2  ;;  %v106_v3 = vsel %vm101_vm0, %v100_v0, 0  ;;  %941 = vmatprep.subr.mxu1 %v1096_v2  ;;  %v103_v4 = vsel %vm101_vm0, %v99_v1, 0  ;;  %s1180_s5 = sld [smem:[#allocation8]]  ;;  %s1182_s16 = sld [smem:[#allocation8 + $0x1]]  ;;  %vm882_vm2 = vcmask 57344  }
  0x5c   :  { %v109_v5 = vand.u32 4294901760, %v106_v3  ;;  %958 = vmatprep.mubr.msk.f32.mxu0 %vm1097_vm1, %v1096_v2  ;;  %v174_v6 = vand.u32 4294901760, %v103_v4  ;;  %943 = vmatprep.mubr.msk.f32.mxu1 %vm1097_vm1, %v1096_v2  ;;  %s1184_s17 = sld [smem:[#allocation8 + $0x2]]  ;;  %s1186_s18 = sld [smem:[#allocation8 + $0x3]] }
  0x5d   :  { %s1188_s19 = sld [smem:[#allocation8 + $0x4]]  ;;  %s1190_s20 = sld [smem:[#allocation9]] }
  0x5e   :  { %v186_v7 = vsub.f32 %v106_v3, %v109_v5  ;;  %957 = vmatpush3.xpose.msra.mxu0 %v109_v5  ;;  %942 = vmatpush3.xpose.msra.mxu1 %v109_v5  ;;  %v175_v8 = vsub.f32 %v103_v4, %v174_v6  ;;  %s1192_s21 = sld [smem:[#allocation9 + $0x1]]  ;;  %s1194_s22 = sld [smem:[#allocation9 + $0x2]] }
  0x5f   :  { %946 = vmatprep.subr.mxu1 %v1096_v2  ;;  %961 = vmatprep.subr.mxu0 %v1096_v2  ;;  %s1196_s23 = sld [smem:[#allocation9 + $0x3]]  ;;  %s1198_s24 = sld [smem:[#allocation9 + $0x4]] }
  0x60   :  { %v176_v9 = vand.u32 4294901760, %v175_v8  ;;  %v187_v10 = vand.u32 4294901760, %v186_v7  ;;  %s1200_s25 = sld [smem:[#allocation9 + $0x80]]  ;;  %s1202_s26 = sld [smem:[#allocation9 + $0x81]] }
  0x61   :  { %s1204_s27 = sld [smem:[#allocation9 + $0x82]]  ;;  %s1206_s28 = sld [smem:[#allocation9 + $0x83]]  ;;  %v555_v15 = vstv %s1180_s5  ;;  %v559_v16 = vstv %s1182_s16 }
  0x62   :  { %959 = vmatmul.mubr.f32.vlgmr.msra.gmra.mrb[0].mxu0 %v176_v9  ;;  %v177_v11 = vsub.f32 %v175_v8, %v176_v9  ;;  %v188_v12 = vsub.f32 %v186_v7, %v187_v10  ;;  %s1208_s0 = sld [smem:[#allocation9 + $0x84]]  ;;  %s1210_s2 = sld [smem:[#allocation9 + $0x100]]  ;;  %v563_v18 = vstv %s1184_s17  ;;  %v567_v19 = vstv %s1186_s18 }
  0x63   :  { %962 = vmatpush3.xpose.msra.mxu0 %v187_v10  ;;  %963 = vmatprep.mubr.msk.f32.mxu0 %vm1097_vm1, %v1096_v2  ;;  %s1212_s29 = sld [smem:[#allocation9 + $0x101]]  ;;  %s1214_s30 = sld [smem:[#allocation9 + $0x102]]  ;;  %v571_v20 = vstv %s1188_s19  ;;  %v1246_v21 = vstv %s1190_s20 }
  0x64   :  { %v178_v13 = vand.u32 4294901760, %v177_v11  ;;  %v189_v14 = vand.u32 4294901760, %v188_v12  ;;  %966 = vmatprep.subr.mxu0 %v1096_v2  ;;  %s1216_s8 = sld [smem:[#allocation9 + $0x103]]  ;;  %s1218_s10 = sld [smem:[#allocation9 + $0x104]]  ;;  %v1253_v23 = vstv %s1192_s21  ;;  %v1256_v24 = vstv %s1194_s22 }
  0x65   :  { %s1220_s11 = sld [smem:[#allocation9 + $0x180]]  ;;  %s1222_s3 = sld [smem:[#allocation9 + $0x181]]  ;;  %v1259_v25 = vstv %s1196_s23  ;;  %v1262_v26 = vstv %s1198_s24 }
  0x66   :  { %944 = vmatmul.mubr.f32.vlgmr.msra.gmra.mrb[0].mxu1 %v178_v13  ;;  %s1224_s12 = sld [smem:[#allocation9 + $0x182]]  ;;  %s1226_s13 = sld [smem:[#allocation9 + $0x183]]  ;;  %v1267_v27 = vstv %s1200_s25  ;;  %v1270_v28 = vstv %s1202_s26 }
  0x67   :  { %947 = vmatpush3.xpose.msra.mxu1 %v189_v14  ;;  %948 = vmatprep.mubr.msk.f32.mxu1 %vm1097_vm1, %v1096_v2  ;;  %s1228_s14 = sld [smem:[#allocation9 + $0x184]]  ;;  %s1230_s1 = sld [smem:[#allocation9 + $0x200]]  ;;  %v1273_v29 = vstv %s1204_s27  ;;  %v1276_v30 = vstv %s1206_s28 }
  0x68   :  { %951 = vmatprep.subr.mxu1 %v1096_v2  ;;  %s1232_s9 = sld [smem:[#allocation9 + $0x201]]  ;;  %s1234_s15 = sld [smem:[#allocation9 + $0x202]]  ;;  %v1283_v31 = vstv %s1208_s0  ;;  %v1286_v32 = vstv %s1210_s2 }
  0x69   :  { %s1236_s4 = sld [smem:[#allocation9 + $0x203]]  ;;  %s1240_s7 = sld [smem:[#allocation11]]  ;;  %v1289_v33 = vstv %s1212_s29  ;;  %v1292_v34 = vstv %s1214_s30 }
  0x6a   :  { %964 = vmatmul.mubr.f32.vlgmr.msra.gmra.mrb[0].mxu0 %v174_v6  ;;  %s1248_s6 = sld [smem:[#allocation11 + $0x1]]  ;;  %s1264_s5 = sld [smem:[#allocation11 + $0x2]]  ;;  %v1295_v36 = vstv %s1216_s8  ;;  %v1298_v37 = vstv %s1218_s10 }
  0x6b   :  { %967 = vmatpush3.xpose.msra.mxu0 %v109_v5  ;;  %968 = vmatprep.mubr.msk.f32.mxu0 %vm1097_vm1, %v1096_v2  ;;  %s1278_s16 = sld [smem:[#allocation11 + $0x3]]  ;;  %s1280_s17 = sld [smem:[#allocation11 + $0x4]]  ;;  %v1301_v38 = vstv %s1220_s11  ;;  %v1304_v39 = vstv %s1222_s3 }
  0x6c   :  { %v1307_v41 = vstv %s1224_s12  ;;  %v1310_v42 = vstv %s1226_s13  ;;  %s1426_s19 = sld [smem:[#allocation12 + $0x2]]  ;;  %s1432_s20 = sld [smem:[#allocation12 + $0x3]] }
  0x6d   :  { %v1313_v43 = vstv %s1228_s14  ;;  %v1316_v45 = vstv %s1230_s1  ;;  %s928_s21 = sld [smem:[#allocation12 + $0x4]]  ;;  %s1465_s24 = sld [smem:[#allocation20_spill]] }
  0x6e   :  { %949 = vmatmul.mubr.f32.vlgmr.msra.gmra.mrb[0].mxu1 %v174_v6  ;;  %v1319_v46 = vstv %s1232_s9  ;;  %v1322_v47 = vstv %s1234_s15  ;;  %s1466_s27 = sld [smem:[#allocation21_spill]] }
  0x6f   :  { %952 = vmatpush3.xpose.msra.mxu1 %v186_v7  ;;  %953 = vmatprep.mubr.msk.f32.mxu1 %vm1097_vm1, %v1096_v2  ;;  %1463 = sst [smem:[#allocation19_spill]] %s1236_s4  ;;  %s1250_s4 = sld [smem:[#allocation9 + $0x204]]  ;;  %v1328_v54 = vstv %s1240_s7 }
  0x70   :  { %s1464_s18 = sld [smem:[#allocation19_spill]]  ;;  %v1331_v55 = vstv %s1248_s6  ;;  %v1337_v62 = vstv %s1264_s5  ;;  %s1419_s7 = sld [smem:[#allocation12 + $0x1]] }
  0x71   :  { %v1340_v63 = vstv %s1278_s16  ;;  %v1343_v0 = vstv %s1280_s17  ;;  %s1412_s6 = sld [smem:[#allocation12]] }
  0x72   :  { %969 = vmatmul.mubr.f32.vlgmr.msra.gmra.mrb[0].mxu0 %v174_v6 }
  0x75   :  { %v1334_v56 = vstv %s1250_s4 }
  0x76   :  { %954 = vmatmul.mubr.f32.vlgmr.msra.gmra.mrb[0].mxu1 %v175_v8  ;;  %v1325_v48 = vstv %s1464_s18 }
 0x145   :  { %v550_v17 = vpop.f32.mrb[0].mxu0 }
 0x146   :  { %v970_v22 = vpop.f32.mrb[1].mxu0 }
 0x149   :  { %v330_v35 = vpop.f32.mrb[0].mxu1 }
 0x14a   :  { %v971_v40 = vadd.f32 %v550_v17, %v330_v35  ;;  %v955_v44 = vpop.f32.mrb[1].mxu1 }
 0x14c   :  { %v556_v49 = vadd.f32 %v971_v40, %v555_v15  ;;  %v560_v50 = vadd.f32 %v971_v40, %v559_v16  ;;  %v564_v51 = vadd.f32 %v971_v40, %v563_v18  ;;  %v568_v52 = vadd.f32 %v971_v40, %v567_v19 }
 0x14d   :  { %v572_v53 = vadd.f32 %v971_v40, %v571_v20 }
 0x14e   :  { %v557_v57 = vmax.f32 %v556_v49, 0.0  ;;  %v561_v58 = vmax.f32 %v560_v50, 0.0  ;;  %v565_v59 = vmax.f32 %v564_v51, 0.0  ;;  %v569_v60 = vmax.f32 %v568_v52, 0.0 }
 0x14f   :  { %v573_v61 = vmax.f32 %v572_v53, 0.0 }
 0x150   :  { %v576_v1 = vmul.f32 %v1246_v21, %v557_v57  ;;  %v579_v2 = vmul.f32 %v1253_v23, %v561_v58  ;;  %v586_v3 = vmul.f32 %v1256_v24, %v565_v59  ;;  %v593_v4 = vmul.f32 %v1259_v25, %v569_v60 }
 0x151   :  { %v600_v5 = vmul.f32 %v1262_v26, %v573_v61  ;;  %v611_v6 = vmul.f32 %v1267_v27, %v557_v57  ;;  %v614_v7 = vmul.f32 %v1270_v28, %v561_v58  ;;  %v621_v8 = vmul.f32 %v1273_v29, %v565_v59 }
 0x152   :  { %v581_v9 = vrot.slane %v579_v2, 1  ;;  %v588_v10 = vrot.slane %v586_v3, 2  ;;  %v595_v11 = vrot.slane %v593_v4, 3  ;;  %v628_v12 = vmul.f32 %v1276_v30, %v569_v60 }
 0x153   :  { %v602_v13 = vrot.slane %v600_v5, 4  ;;  %v616_v14 = vrot.slane %v614_v7, 1  ;;  %v623_v15 = vrot.slane %v621_v8, 2  ;;  %v635_v16 = vmul.f32 %v1283_v31, %v573_v61 }
 0x154   :  { %v583_v17 = vadd.f32 %v581_v9, %v576_v1  ;;  %v630_v18 = vrot.slane %v628_v12, 3  ;;  %v646_v19 = vmul.f32 %v1286_v32, %v557_v57  ;;  %v649_v20 = vmul.f32 %v1289_v33, %v561_v58 }
 0x155   :  { %v618_v22 = vadd.f32 %v616_v14, %v611_v6  ;;  %v637_v35 = vrot.slane %v635_v16, 4  ;;  %v656_v40 = vmul.f32 %v1292_v34, %v565_v59  ;;  %v663_v44 = vmul.f32 %v1295_v36, %v569_v60 }
 0x156   :  { %v590_v49 = vadd.f32 %v588_v10, %v583_v17  ;;  %v651_v50 = vrot.slane %v649_v20, 1  ;;  %v670_v51 = vmul.f32 %v1298_v37, %v573_v61  ;;  %v681_v52 = vmul.f32 %v1301_v38, %v557_v57 }
 0x157   :  { %v625_v53 = vadd.f32 %v623_v15, %v618_v22  ;;  %v658_v2 = vrot.slane %v656_v40, 2  ;;  %v665_v1 = vrot.slane %v663_v44, 3  ;;  %v684_v3 = vmul.f32 %v1304_v39, %v561_v58 }
 0x158   :  { %v597_v4 = vadd.f32 %v595_v11, %v590_v49  ;;  %v653_v5 = vadd.f32 %v651_v50, %v646_v19  ;;  %v672_v7 = vrot.slane %v670_v51, 4  ;;  %v691_v6 = vmul.f32 %v1307_v41, %v565_v59 }
 0x159   :  { %v632_v8 = vadd.f32 %v630_v18, %v625_v53  ;;  %v686_v9 = vrot.slane %v684_v3, 1  ;;  %v698_v12 = vmul.f32 %v1310_v42, %v569_v60  ;;  %v705_v10 = vmul.f32 %v1313_v43, %v573_v61 }
 0x15a   :  { %v604_v14 = vadd.f32 %v602_v13, %v597_v4  ;;  %v660_v16 = vadd.f32 %v658_v2, %v653_v5  ;;  %v693_v17 = vrot.slane %v691_v6, 2  ;;  %v716_v15 = vmul.f32 %v1316_v45, %v557_v57 }
 0x15b   :  { %v639_v20 = vadd.f32 %v637_v35, %v632_v8  ;;  %v688_v22 = vadd.f32 %v686_v9, %v681_v52  ;;  %v700_v40 = vrot.slane %v698_v12, 3  ;;  %v707_v44 = vrot.slane %v705_v10, 4 }
 0x15c   :  { %v607_v11 = vadd.f32 %v1328_v54, %v604_v14  ;;  %v667_v19 = vadd.f32 %v665_v1, %v660_v16  ;;  %v719_v49 = vmul.f32 %v1319_v46, %v561_v58  ;;  %v726_v18 = vmul.f32 %v1322_v47, %v565_v59 }
 0x15d   :  { %v642_v50 = vadd.f32 %v1331_v55, %v639_v20  ;;  %v695_v51 = vadd.f32 %v693_v17, %v688_v22  ;;  %v733_v13 = vmul.f32 %v1325_v48, %v569_v60  ;;  %v740_v53 = vmul.f32 %v1334_v56, %v573_v61 }
 0x15e   :  { %v608_v2 = vmax.f32 %v607_v11, 0.0  ;;  %v674_v57 = vadd.f32 %v672_v7, %v667_v19  ;;  %v721_v35 = vrot.slane %v719_v49, 1  ;;  %v728_v52 = vrot.slane %v726_v18, 2 }
 0x15f   :  { %v643_v3 = vmax.f32 %v642_v50, 0.0  ;;  %v702_v4 = vadd.f32 %v700_v40, %v695_v51  ;;  %v735_v5 = vrot.slane %v733_v13, 3  ;;  %v742_v6 = vrot.slane %v740_v53, 4 }
 0x160   :  { %v677_v1 = vadd.f32 %v1337_v62, %v674_v57  ;;  %v723_v58 = vadd.f32 %v721_v35, %v716_v15  ;;  %v749_v59 = vmul.f32 %v608_v2, %v1246_v21  ;;  %v760_v8 = vmul.f32 %v1267_v27, %v608_v2 }
 0x161   :  { %v709_v9 = vadd.f32 %v707_v44, %v702_v4  ;;  %v750_v60 = vmul.f32 %v643_v3, %v1253_v23  ;;  %v761_v61 = vmul.f32 %v643_v3, %v1270_v28  ;;  %v771_v7 = vmul.f32 %v1286_v32, %v608_v2 }
 0x162   :  { %v678_v12 = vmax.f32 %v677_v1, 0.0  ;;  %v730_v10 = vadd.f32 %v728_v52, %v723_v58  ;;  %v772_v14 = vmul.f32 %v1289_v33, %v643_v3  ;;  %v782_v16 = vmul.f32 %v1301_v38, %v608_v2 }
 0x163   :  { %v712_v17 = vadd.f32 %v1340_v63, %v709_v9  ;;  %v751_v15 = vadd.f32 %v750_v60, %v749_v59  ;;  %v762_v20 = vadd.f32 %v761_v61, %v760_v8  ;;  %v783_v22 = vmul.f32 %v1304_v39, %v643_v3 }
 0x164   :  { %v737_v40 = vadd.f32 %v735_v5, %v730_v10  ;;  %v752_v44 = vmul.f32 %v678_v12, %v1256_v24  ;;  %v763_v11 = vmul.f32 %v678_v12, %v1273_v29  ;;  %v773_v19 = vadd.f32 %v772_v14, %v771_v7 }
 0x165   :  { %v713_v49 = vmax.f32 %v712_v17, 0.0  ;;  %v774_v18 = vmul.f32 %v678_v12, %v1292_v34  ;;  %v784_v50 = vadd.f32 %v783_v22, %v782_v16  ;;  %v785_v51 = vmul.f32 %v1307_v41, %v678_v12 }
 0x166   :  { %v744_v13 = vadd.f32 %v742_v6, %v737_v40  ;;  %v753_v53 = vadd.f32 %v752_v44, %v751_v15  ;;  %v764_v57 = vadd.f32 %v763_v11, %v762_v20  ;;  %v793_v35 = vmul.f32 %v1316_v45, %v608_v2 }
 0x167   :  { %v754_v52 = vmul.f32 %v713_v49, %v1259_v25  ;;  %v765_v4 = vmul.f32 %v713_v49, %v1276_v30  ;;  %v775_v5 = vadd.f32 %v774_v18, %v773_v19  ;;  %v776_v1 = vmul.f32 %v713_v49, %v1295_v36 }
 0x168   :  { %v747_v58 = vadd.f32 %v1343_v0, %v744_v13  ;;  %v786_v59 = vadd.f32 %v785_v51, %v784_v50  ;;  %v787_v8 = vmul.f32 %v713_v49, %v1310_v42  ;;  %v794_v9 = vmul.f32 %v1319_v46, %v643_v3 }
 0x169   :  { %v755_v60 = vadd.f32 %v754_v52, %v753_v53  ;;  %v766_v6 = vadd.f32 %v765_v4, %v764_v57  ;;  %v777_v7 = vadd.f32 %v776_v1, %v775_v5  ;;  %v796_v14 = vmul.f32 %v1322_v47, %v678_v12 }
 0x16a   :  { %v748_v61 = vmax.f32 %v747_v58, 0.0  ;;  %v788_v10 = vadd.f32 %v787_v8, %v786_v59  ;;  %v795_v2 = vadd.f32 %v794_v9, %v793_v35  ;;  %v798_v40 = vmul.f32 %v1325_v48, %v713_v49 }
 0x16c   :  { %v756_v16 = vmul.f32 %v748_v61, %v1262_v26  ;;  %v767_v17 = vmul.f32 %v748_v61, %v1283_v31  ;;  %v778_v15 = vmul.f32 %v748_v61, %v1298_v37  ;;  %v789_v20 = vmul.f32 %v748_v61, %v1313_v43 }
 0x16d   :  { %v797_v22 = vadd.f32 %v796_v14, %v795_v2  ;;  %v800_v50 = vmul.f32 %v748_v61, %v1334_v56 }
 0x16e   :  { %v757_v3 = vadd.f32 %v756_v16, %v755_v60  ;;  %v768_v44 = vadd.f32 %v767_v17, %v766_v6  ;;  %v779_v11 = vadd.f32 %v778_v15, %v777_v7  ;;  %v790_v19 = vadd.f32 %v789_v20, %v788_v10 }
 0x16f   :  { %v799_v18 = vadd.f32 %v798_v40, %v797_v22 }
 0x170   :  { %v758_v12 = vadd.f32 %v757_v3, %v1328_v54  ;;  %v769_v51 = vadd.f32 %v768_v44, %v1331_v55  ;;  %v780_v13 = vadd.f32 %v779_v11, %v1337_v62  ;;  %v791_v53 = vadd.f32 %v790_v19, %v1340_v63 }
 0x171   :  { %v801_v57 = vadd.f32 %v800_v50, %v799_v18 }
 0x172   :  { %v759_v35 = vmax.f32 %v758_v12, 0.0  ;;  %v770_v52 = vmax.f32 %v769_v51, 0.0  ;;  %v781_v4 = vmax.f32 %v780_v13, 0.0  ;;  %v792_v49 = vmax.f32 %v791_v53, 0.0 }
 0x173   :  { %v802_v5 = vadd.f32 %v801_v57, %v1343_v0  ;;  %v863_v13 = vstv %s1419_s7 }
 0x174   :  { %v804_v1 = vmul.f32 %v759_v35, %v1246_v21  ;;  %v805_v58 = vmul.f32 %v770_v52, %v1253_v23  ;;  %v815_v8 = vmul.f32 %v759_v35, %v1267_v27  ;;  %v816_v9 = vmul.f32 %v770_v52, %v1270_v28 }
 0x175   :  { %v803_v59 = vmax.f32 %v802_v5, 0.0  ;;  %v807_v6 = vmul.f32 %v781_v4, %v1256_v24  ;;  %v826_v61 = vmul.f32 %v759_v35, %v1286_v32  ;;  %v827_v7 = vmul.f32 %v770_v52, %v1289_v33 }
 0x176   :  { %v806_v60 = vadd.f32 %v805_v58, %v804_v1  ;;  %v809_v10 = vmul.f32 %v792_v49, %v1259_v25  ;;  %v817_v2 = vadd.f32 %v816_v9, %v815_v8  ;;  %v818_v21 = vmul.f32 %v781_v4, %v1273_v29 }
 0x177   :  { %v820_v23 = vmul.f32 %v792_v49, %v1276_v30  ;;  %v811_v27 = vmul.f32 %v803_v59, %v1262_v26  ;;  %v828_v28 = vadd.f32 %v827_v7, %v826_v61  ;;  %v829_v16 = vmul.f32 %v781_v4, %v1292_v34 }
 0x178   :  { %v808_v14 = vadd.f32 %v807_v6, %v806_v60  ;;  %v819_v24 = vadd.f32 %v818_v21, %v817_v2  ;;  %v822_v32 = vmul.f32 %v803_v59, %v1283_v31  ;;  %v837_v33 = vmul.f32 %v759_v35, %v1301_v38 }
 0x179   :  { %v838_v25 = vmul.f32 %v770_v52, %v1304_v39  ;;  %v830_v15 = vadd.f32 %v829_v16, %v828_v28  ;;  %v831_v29 = vmul.f32 %v792_v49, %v1295_v36  ;;  %v840_v30 = vmul.f32 %v781_v4, %v1307_v41 }
 0x17a   :  { %v810_v17 = vadd.f32 %v809_v10, %v808_v14  ;;  %v821_v26 = vadd.f32 %v820_v23, %v819_v24  ;;  %v848_v20 = vmul.f32 %v759_v35, %v1316_v45  ;;  %v849_v22 = vmul.f32 %v770_v52, %v1319_v46 }
 0x17b   :  { %v839_v34 = vadd.f32 %v838_v25, %v837_v33  ;;  %v832_v40 = vadd.f32 %v831_v29, %v830_v15  ;;  %v833_v38 = vmul.f32 %v803_v59, %v1298_v37  ;;  %v842_v39 = vmul.f32 %v792_v49, %v1310_v42 }
 0x17c   :  { %v812_v31 = vadd.f32 %v811_v27, %v810_v17  ;;  %v823_v36 = vadd.f32 %v822_v32, %v821_v26  ;;  %v850_v3 = vadd.f32 %v849_v22, %v848_v20  ;;  %v851_v44 = vmul.f32 %v781_v4, %v1322_v47 }
 0x17d   :  { %v841_v41 = vadd.f32 %v840_v30, %v839_v34  ;;  %v834_v19 = vadd.f32 %v833_v38, %v832_v40  ;;  %v844_v45 = vmul.f32 %v803_v59, %v1313_v43  ;;  %v860_v46 = vstv %s1412_s6 }
 0x17e   :  { %v813_v11 = vadd.f32 %v812_v31, %v1328_v54  ;;  %v824_v37 = vadd.f32 %v823_v36, %v1331_v55  ;;  %v852_v42 = vadd.f32 %v851_v44, %v850_v3  ;;  %v853_v50 = vmul.f32 %v792_v49, %v1325_v48 }
 0x17f   :  { %v843_v18 = vadd.f32 %v842_v39, %v841_v41  ;;  %v835_v51 = vadd.f32 %v834_v19, %v1337_v62  ;;  %v855_v57 = vmul.f32 %v803_v59, %v1334_v56  ;;  %v867_v52 = vstv %s1426_s19 }
 0x180   :  { %v814_v12 = vmax.f32 %v813_v11, 0.0  ;;  %v825_v47 = vmax.f32 %v824_v37, 0.0  ;;  %v854_v54 = vadd.f32 %v853_v50, %v852_v42  ;;  %v871_v1 = vstv %s1432_s20 }
 0x181   :  { %v845_v53 = vadd.f32 %v844_v45, %v843_v18  ;;  %v836_v43 = vmax.f32 %v835_v51, 0.0  ;;  %v875_v62 = vstv %s928_s21  ;;  %v879_v56 = vstv %s1465_s24 }
 0x182   :  { %v861_v35 = vmul.f32 %v860_v46, %v814_v12  ;;  %v856_v55 = vadd.f32 %v855_v57, %v854_v54  ;;  %v864_v5 = vmul.f32 %v863_v13, %v825_v47 }
 0x183   :  { %v846_v4 = vadd.f32 %v845_v53, %v1340_v63  ;;  %v868_v8 = vmul.f32 %v867_v52, %v836_v43 }
 0x184   :  { %v857_v48 = vadd.f32 %v856_v55, %v1343_v0  ;;  %v865_v49 = vadd.f32 %v864_v5, %v861_v35 }
 0x185   :  { %v847_v58 = vmax.f32 %v846_v4, 0.0 }
 0x186   :  { %v858_v9 = vmax.f32 %v857_v48, 0.0  ;;  %v869_v60 = vadd.f32 %v868_v8, %v865_v49 }
 0x187   :  { %v872_v6 = vmul.f32 %v871_v1, %v847_v58 }
 0x188   :  { %v876_v7 = vmul.f32 %v875_v62, %v858_v9 }
 0x189   :  { %v873_v61 = vadd.f32 %v872_v6, %v869_v60 }
 0x18b   :  { %v877_v59 = vadd.f32 %v876_v7, %v873_v61 }
 0x18d   :  { %v880_v63 = vadd.f32 %v879_v56, %v877_v59 }
 0x18f   :  { %v881_v10 = vmax.f32 %v880_v63, 0.0 }
 0x191   :  { %883 = vst.msk [vmem:[%s1466_s27] sm:$0x1] %vm882_vm2, %v881_v10 }
 0x192   :  { %888 = vsyncpa [#allocation4], 1 }
 0x193   :  { %889 = vsyncpa [#allocation7], 1 }
 0x194   :  { %890 = vsyncpa [#allocation5], 1 }
 0x195   :  { %891 = vsyncpa [#allocation10], 1 }
 0x196   :  { %892 = vsyncpa [#allocation13], 1 }

</bundles_post_ra>
